<compile_context>
chip_gen: v5e
topology: v5e:2x2
jax: 0.10.0
libtpu: 0.0.40
codegen_flags: <defaults>
</compile_context>

<pallas_src>
import jax
import jax.numpy as jnp
from jax.experimental import pallas as pl
from jax.experimental.pallas import tpu as pltpu

_EPS = 1e-12  # matches torch.nn.functional.normalize default eps

# Single-block path VMEM budget: ~4 MiB per f32 buffer (in + out, double
# buffered) stays comfortably under the 32 MiB scoped-VMEM default on all of
# v5e / v6e / v7x.
_MAX_SINGLE_BLOCK_ELEMS = 1 << 20


# ----------------------------------------------------------------------------
# Recommended fused path for tiny C: let XLA fuse this into the consumer
# (no pallas_call launch overhead, no HBM<->VMEM round trip for 128 bytes).
# ----------------------------------------------------------------------------
def one_normed_embedding_forward_fused(emb: jax.Array) -> jax.Array:
    x = emb.astype(jnp.float32)
    norm = jnp.sqrt(jnp.sum(x * x, axis=1, keepdims=True))
    return (x / jnp.maximum(norm, _EPS)).astype(emb.dtype)


# ----------------------------------------------------------------------------
# Pallas kernels
# ----------------------------------------------------------------------------
def _l2_normalize_kernel(emb_ref, out_ref):
    """Single-block path: whole [1, C] row resident in one VMEM tile."""
    x = emb_ref[...].astype(jnp.float32)
    ssq = jnp.sum(x * x, axis=1, keepdims=True)                   # (1, 1)
    # Clamp the *norm* (not the squared sum) -> matches F.normalize semantics.
    inv = pl.reciprocal(jnp.maximum(jnp.sqrt(ssq), _EPS), approx=False)
    # Single broadcast multiply of a (1,1) scalar against the tile.
    out_ref[...] = (x * inv).astype(out_ref.dtype)


def _sq_sum_kernel(emb_ref, ssq_ref):
    """Pass 1 (gridded): accumulate sum of squares over C chunks."""
    @pl.when(pl.program_id(0) == 0)
    def _():
        ssq_ref[...] = jnp.zeros_like(ssq_ref)
    x = emb_ref[...].astype(jnp.float32)
    ssq_ref[...] += jnp.sum(x * x, axis=1, keepdims=True)


def _scale_kernel(emb_ref, ssq_ref, out_ref):
    """Pass 2 (gridded): scale each chunk by 1 / max(norm, eps)."""
    inv = pl.reciprocal(jnp.maximum(jnp.sqrt(ssq_ref[...]), _EPS), approx=False)
    x = emb_ref[...].astype(jnp.float32)
    out_ref[...] = (x * inv).astype(out_ref.dtype)


# ----------------------------------------------------------------------------
# Wrappers
# ----------------------------------------------------------------------------
def _forward_single_block(emb: jax.Array) -> jax.Array:
    C = emb.shape[1]
    return pl.pallas_call(
        _l2_normalize_kernel,
        out_shape=jax.ShapeDtypeStruct((1, C), emb.dtype),
        # block == full array, so the (8,128) divisibility rule is satisfied.
        in_specs=[pl.BlockSpec((1, C), lambda: (0, 0))],
        out_specs=pl.BlockSpec((1, C), lambda: (0, 0)),
    )(emb)


def _forward_two_pass(emb: jax.Array, chunk: int) -> jax.Array:
    C = emb.shape[1]
    n = C // chunk

    # Pass 1: reduction over the chunk axis into a resident (1,1) accumulator.
    ssq = pl.pallas_call(
        _sq_sum_kernel,
        out_shape=jax.ShapeDtypeStruct((1, 1), jnp.float32),
        grid=(n,),
        in_specs=[pl.BlockSpec((1, chunk), lambda j: (0, j))],
        out_specs=pl.BlockSpec((1, 1), lambda j: (0, 0)),
        compiler_params=pltpu.CompilerParams(
            dimension_semantics=("arbitrary",)),   # reduction axis
    )(emb)

    # Pass 2: independent per-chunk scaling -> lane-dense 128-multiple stores,
    # chunk axis is parallel (megacore-shardable on v7x).
    return pl.pallas_call(
        _scale_kernel,
        out_shape=jax.ShapeDtypeStruct((1, C), emb.dtype),
        grid=(n,),
        in_specs=[pl.BlockSpec((1, chunk), lambda j: (0, j)),
                  pl.BlockSpec((1, 1), lambda j: (0, 0))],
        out_specs=pl.BlockSpec((1, chunk), lambda j: (0, j)),
        compiler_params=pltpu.CompilerParams(
            dimension_semantics=("parallel",)),
    )(emb, ssq)


def _pick_chunk(C: int, max_chunk: int = 64 * 1024) -> int | None:
    """Largest 128-multiple chunk <= max_chunk that divides C."""
    start = min(C, max_chunk)
    start -= start % 128
    for tc in range(start, 0, -128):
        if C % tc == 0:
            return tc
    return None


def one_normed_embedding_forward(emb: jax.Array, *, chunk: int | None = None) -> jax.Array:
    """L2-normalize a [1, C] embedding along dim=1 (Pallas TPU kernel)."""
    assert emb.ndim == 2 and emb.shape[0] == 1, "emb must be [1, C]"
    C = emb.shape[1]
    if chunk is None:
        if C <= _MAX_SINGLE_BLOCK_ELEMS:
            return _forward_single_block(emb)
        chunk = _pick_chunk(C)
        if chunk is None:
            # TODO(synk): huge C not divisible by 128 would need a padded /
            # BoundedSlice variant; fall back to a single (VMEM-hungry) block.
            return _forward_single_block(emb)
    assert C % chunk == 0 and (chunk % 128 == 0 or chunk == C), \
        "chunk must divide C and be a multiple of 128 (or equal C)"
    return _forward_two_pass(emb, chunk)


if __name__ == "__main__":
    k0, k1 = jax.random.split(jax.random.PRNGKey(0))

    # --- Case 1: the module's typical tiny shape (channel=32) ---------------
    # Deterministic parameter init mirroring torch.rand([1, channel]).
    channel = 32
    emb = jax.random.uniform(k0, (1, channel), dtype=jnp.float32)

    out = jax.block_until_ready(one_normed_embedding_forward(emb))
    ref = emb / jnp.maximum(jnp.linalg.norm(emb, axis=1, keepdims=True), _EPS)
    assert out.shape == (1, channel)
    assert jnp.allclose(out, ref, atol=1e-6), "single-block mismatch vs. reference"
    assert jnp.allclose(jnp.linalg.norm(out, axis=1), 1.0, atol=1e-6)

    # Fused (non-Pallas) path recommended for this size -> same numbers.
    out_fused = jax.block_until_ready(jax.jit(one_normed_embedding_forward_fused)(emb))
    assert jnp.allclose(out_fused, ref, atol=1e-6)

    # --- Case 2: exercise the gridded two-pass path (small, forced chunk) ---
    channel2 = 512
    emb2 = jax.random.uniform(k1, (1, channel2), dtype=jnp.float32)
    out2 = jax.block_until_ready(one_normed_embedding_forward(emb2, chunk=128))
    ref2 = emb2 / jnp.maximum(jnp.linalg.norm(emb2, axis=1, keepdims=True), _EPS)
    assert out2.shape == (1, channel2)
    assert jnp.allclose(out2, ref2, atol=1e-6), "two-pass mismatch vs. reference"
    assert jnp.allclose(jnp.linalg.norm(out2, axis=1), 1.0, atol=1e-6)

    print("KERNEL_OK")
</pallas_src>

<mosaic_0001>
module attributes {stable_mosaic.version = 11 : i64} {
  func.func @_l2_normalize_kernel(%arg0: memref<1x32xf32, #tpu.memory_space<vmem>>, %arg1: memref<1x32xf32, #tpu.memory_space<vmem>>) attributes {dimension_semantics = [], scalar_prefetch = 0 : i64, scratch_operands = 0 : i64, tpu.core_type = #tpu.core_type<tc>} {
    %c0 = arith.constant 0 : index
    %c0_0 = arith.constant 0 : index
    %0 = vector.load %arg0[%c0, %c0_0] : memref<1x32xf32, #tpu.memory_space<vmem>>, vector<1x32xf32>
    %1 = arith.mulf %0, %0 : vector<1x32xf32>
    %cst = arith.constant dense<0.000000e+00> : vector<1xf32>
    %2 = vector.multi_reduction <add>, %1, %cst [1] : vector<1x32xf32> to vector<1xf32>
    %3 = vector.shape_cast %2 : vector<1xf32> to vector<1x1xf32>
    %4 = math.sqrt %3 : vector<1x1xf32>
    %cst_1 = arith.constant 9.99999996E-13 : f32
    %5 = vector.broadcast %cst_1 : f32 to vector<1x1xf32>
    %6 = arith.maximumf %4, %5 : vector<1x1xf32>
    %7 = tpu.reciprocal %6 : vector<1x1xf32> -> vector<1x1xf32>
    %8 = vector.broadcast %7 : vector<1x1xf32> to vector<1x32xf32>
    %9 = arith.mulf %0, %8 : vector<1x32xf32>
    %c0_2 = arith.constant 0 : index
    %c0_3 = arith.constant 0 : index
    %10 = vector.load %arg1[%c0_2, %c0_3] : memref<1x32xf32, #tpu.memory_space<vmem>>, vector<1x32xf32>
    tpu.vector_store %arg1[%c0_2, %c0_3], %9 {strides = array<i32>} : memref<1x32xf32, #tpu.memory_space<vmem>>, vector<1x32xf32>,
    return
  }
}

</mosaic_0001>

<bundles_post_ra>
// kernel: tpu_custom_call.1
= control target key start
LH: loop header
LB: loop body
LE: loop exit
PB: predicated region body
PF: predicated region fallthrough
CT: control target
= control target key end

     0   :  { %6 = vsyncpa [#allocation3], 0  ;;  %s153_s0 = inlined_call_operand.hbm [shape: f32[1,32], index: 0, kind: input, shape index: {}]   ;;  %s154_s1 = inlined_call_operand.hbm [shape: f32[1,32], index: 1, kind: output, shape index: {}]  }
   0x1   :  { %7 = vsyncpa [#allocation4], 0  ;;  %s13_s8 = sshll.u32 %s153_s0, 4  ;;  %s133_s9 = smov [#allocation2]   ;;  %s14_s8 = int_to_ptr.hbm [resolvable:$true] %s13_s8 }
   0x2   :  { %s15_s10 = sshll.u32 %s133_s9, 4  ;;  %s16_s10 = int_to_ptr.vmem [resolvable:$true] %s15_s10 }
   0x3   :  { %18 = dma.hbm_to_vmem [thread:$0]  %s14_s8, 16, %s16_s10, [#allocation3]  }
   0x4   :  { %129 = dma.done.wait [#allocation3], 16  }
   0x5   :  { %130 = vsyncadd [#allocation3], 4294967280  ;;  %v23_v0 = vld [vmem:[#allocation2] sm:$0x1]  ;;  %vm25_vm0 = vcmask 253952   ;;  %s134_s0 = smov [#allocation5]  }
   0x6   :  { %v24_v1 = vmul.f32 %v23_v0, %v23_v0  ;;  %s63_s11 = sshll.u32 %s134_s0, 4  ;;  %s65_s14 = sshll.u32 %s154_s1, 4  ;;  %s64_s11 = int_to_ptr.vmem [resolvable:$true] %s63_s11  ;;  %s66_s14 = int_to_ptr.hbm [resolvable:$true] %s65_s14 }
   0x8   :  { %v26_v2 = vsel %vm25_vm0, %v24_v1, 0.0 }
   0x9   :  { %27 = vadd.xlane.f32.xlu0 %v26_v2 }
  0x7c   :  { %v28_v3 = vpop.xlane.xlu0 %27 }
  0x7d   :  { %77 = vrsqrt.f32 %v28_v3  ;;  %vm36_vm1 = vcmp.eq.f32.partialorder %v28_v3, inf  ;;  %v39_v11 = vand.u32 2147483648, %v28_v3  ;;  %vm38_vm2 = vcmp.eq.f32.partialorder %v28_v3, 0.0 }
  0x83   :  { %v78_v4 = vpop.eup %77 }
  0x84   :  { %v30_v5 = vmul.f32 %v78_v4, %v28_v3 }
  0x86   :  { %v31_v6 = vmul.f32 %v78_v4, %v30_v5 }
  0x88   :  { %v32_v7 = vmul.f32 0.5, %v31_v6 }
  0x8a   :  { %v33_v8 = vsub.f32 1.5, %v32_v7 }
  0x8c   :  { %v34_v9 = vmul.f32 %v78_v4, %v33_v8 }
  0x8e   :  { %v35_v10 = vmul.f32 %v34_v9, %v28_v3 }
  0x90   :  { %v37_v12 = vsel %vm36_vm1, %v28_v3, %v35_v10 }
  0x91   :  { %v40_v13 = vsel %vm38_vm2, %v39_v11, %v37_v12 }
  0x92   :  { %v41_v14 = vmax.f32 %v40_v13, 1e-12 }
  0x94   :  { %79 = vrcp.f32 %v41_v14  ;;  %v53_v18 = vand.u32 2147483648, %v41_v14  ;;  %v51_v20 = vand.u32 2147483647, %v41_v14  ;;  %vm47_vm4 = vweird.f32 %v41_v14 }
  0x96   :  { %v54_v22 = vor.u32 1.1754944e-38, %v53_v18  ;;  %vm52_vm6 = vcmp.eq.f32.partialorder %v51_v20, 8.507059e+37 }
  0x9a   :  { %v80_v15 = vpop.eup %79 }
  0x9b   :  { %v43_v16 = vmul.f32 %v80_v15, %v41_v14  ;;  %vm48_vm3 = vweird.f32 %v80_v15 }
  0x9c   :  { %vm49_vm5 = vmor %vm47_vm4, %vm48_vm3 }
  0x9d   :  { %v44_v17 = vsub.f32 1.0, %v43_v16 }
  0x9f   :  { %v45_v19 = vmul.f32 %v80_v15, %v44_v17 }
  0xa1   :  { %v46_v21 = vadd.f32 %v80_v15, %v45_v19 }
  0xa3   :  { %v50_v23 = vsel %vm49_vm5, %v80_v15, %v46_v21 }
  0xa4   :  { %v55_v24 = vsel %vm52_vm6, %v54_v22, %v50_v23 }
  0xa5   :  { %v56_v25 = vmul.f32 %v55_v24, %v23_v0 }
  0xa7   :  { %57 = vst.msk [vmem:[#allocation5] sm:$0x1] %vm25_vm0, %v56_v25 }
  0xa8   :  { %68 = dma.vmem_to_hbm [thread:$0]  %s64_s11, 16, %s66_s14, [#allocation4]  }
  0xa9   :  { %131 = dma.done.wait [#allocation4], 16  }
  0xaa   :  { %132 = vsyncadd [#allocation4], 4294967280 }
  0xab   :  { %73 = vsyncpa [#allocation3], 1 }
  0xac   :  { %74 = vsyncpa [#allocation4], 1 }

</bundles_post_ra>
